<compile_context>
chip_gen: v5e
topology: v5e:2x2
jax: 0.10.0
libtpu: 0.0.40
codegen_flags: <defaults>
</compile_context>

<pallas_src>
import functools

import jax
import jax.numpy as jnp
from jax.experimental import pallas as pl
from jax.experimental.pallas import tpu as pltpu


def _round_up(x, m):
    return ((x + m - 1) // m) * m


_VMEM_LIMIT = 32 * 1024 * 1024  # valid scoped limit on v5e/v6e/v7x; kernels need only a few MiB


# ---------------------------------------------------------------------------
# AGGLayer kernel: inputs are [deg, TILE_N, D] slabs; the per-node mean over
# neighbors is deg-1 VPU slab adds + one scale.  No matmul, no relayout.
# ---------------------------------------------------------------------------
def _agg_kernel(h_ref, r_ref, out_ref):
    deg = h_ref.shape[0]
    acc = h_ref[0] + r_ref[0]
    for k in range(1, deg):
        acc = acc + h_ref[k] + r_ref[k]
    out_ref[...] = acc * (1.0 / deg)


def agg_layer(h, r, *, tile_n=512):
    """h, r: [deg, N, D] float32 -> [N, D] float32 (mean over neighbors)."""
    deg, N, D = h.shape
    tn = min(tile_n, _round_up(N, 8))
    n_pad = _round_up(N, tn)
    if n_pad != N:
        pad = ((0, 0), (0, n_pad - N), (0, 0))
        h = jnp.pad(h, pad)
        r = jnp.pad(r, pad)

    out = pl.pallas_call(
        _agg_kernel,
        out_shape=jax.ShapeDtypeStruct((n_pad, D), jnp.float32),
        grid=(n_pad // tn,),
        in_specs=[
            pl.BlockSpec((deg, tn, D), lambda i: (0, i, 0)),
            pl.BlockSpec((deg, tn, D), lambda i: (0, i, 0)),
        ],
        out_specs=pl.BlockSpec((tn, D), lambda i: (i, 0)),
        compiler_params=pltpu.CompilerParams(
            dimension_semantics=("parallel",),
            vmem_limit_bytes=_VMEM_LIMIT),
    )(h, r)
    return out[:N]


# ---------------------------------------------------------------------------
# MTILayer kernel: inputs are [deg, TILE_N, D] slabs.
#   - per-k bf16 MXU dots against the resident weight (f32 accumulation)
#   - all per-node reductions are elementwise slab ops over k (VPU), no indicator
#     matrices, no concat, no reshape
#   - per-node softmax max (robust), EUP reciprocal for the denominator
#   - lane-dense [TILE_N, 128] output (padded type columns carry -1e9 bias)
# ---------------------------------------------------------------------------
def _mti_kernel(h_ref, agg_ref, rel_ref, w_ref, b_ref, out_ref, *, beta, inv_temp):
    deg = h_ref.shape[0]
    w = w_ref[...]            # [D, Tp] bf16 (resident)
    b = b_ref[...]            # [1, Tp] f32  (padded cols = -1e9)

    def fc(x_f32):            # [TN, D] f32 -> [TN, Tp] f32
        return jnp.dot(jnp.maximum(x_f32, 0.0).astype(jnp.bfloat16), w,
                       preferred_element_type=jnp.float32) + b

    rel = [rel_ref[k] for k in range(deg)]

    def branch(other_ref):
        xs = [other_ref[k] + rel[k] for k in range(deg)]          # deg x [TN, D]
        mean_x = xs[0]
        for k in range(1, deg):
            mean_x = mean_x + xs[k]
        mean_x = mean_x * (1.0 / deg)

        l_each = [fc(x) for x in xs]                              # deg x [TN, Tp]
        l_mean = fc(mean_x)                                       # [TN, Tp]

        s_each = [jnp.max(l, axis=1, keepdims=True) * inv_temp for l in l_each]
        s_mean = jnp.max(l_mean, axis=1, keepdims=True) * inv_temp

        m = s_mean                                                # per-node max stabilizer
        for s in s_each:
            m = jnp.maximum(m, s)

        e_mean = jnp.exp(s_mean - m)
        num = l_mean * e_mean
        den = e_mean                                              # >= exp(0) term somewhere => den >= 1
        for l, s in zip(l_each, s_each):
            e = jnp.exp(s - m)
            num = num + l * e
            den = den + e
        return num * pl.reciprocal(den, approx=True)

    p1 = branch(h_ref)        # msg branch
    p2 = branch(agg_ref)      # agg branch
    mix = beta * p1 + (1.0 - beta) * p2
    out_ref[...] = jax.nn.sigmoid(mix)


def mti_layer(h, agg, rel, fc_w, fc_b, *, num_types, beta, temperature=1.0, tile_n=512):
    """h/agg/rel: [deg, N, D] float32; returns sigmoid predictions [N, num_types]."""
    deg, N, D = h.shape
    Tp = _round_up(num_types, 128)

    tn = min(tile_n, _round_up(N, 8))
    n_pad = _round_up(N, tn)
    if n_pad != N:
        pad = ((0, 0), (0, n_pad - N), (0, 0))
        h = jnp.pad(h, pad)
        agg = jnp.pad(agg, pad)
        rel = jnp.pad(rel, pad)

    w_pad = jnp.zeros((D, Tp), jnp.bfloat16).at[:, :num_types].set(fc_w.astype(jnp.bfloat16))
    # Padded type columns get a huge negative bias so they can never win the lane-max.
    b_pad = jnp.full((1, Tp), -1e9, jnp.float32).at[:, :num_types].set(fc_b.astype(jnp.float32))

    kern = functools.partial(_mti_kernel, beta=float(beta), inv_temp=float(1.0 / temperature))
    out = pl.pallas_call(
        kern,
        out_shape=jax.ShapeDtypeStruct((n_pad, Tp), jnp.float32),
        grid=(n_pad // tn,),
        in_specs=[
            pl.BlockSpec((deg, tn, D), lambda i: (0, i, 0)),
            pl.BlockSpec((deg, tn, D), lambda i: (0, i, 0)),
            pl.BlockSpec((deg, tn, D), lambda i: (0, i, 0)),
            pl.BlockSpec((D, Tp), lambda i: (0, 0)),    # weights stay resident
            pl.BlockSpec((1, Tp), lambda i: (0, 0)),
        ],
        out_specs=pl.BlockSpec((tn, Tp), lambda i: (i, 0)),
        compiler_params=pltpu.CompilerParams(
            dimension_semantics=("parallel",),
            vmem_limit_bytes=_VMEM_LIMIT),
    )(h, agg, rel, w_pad, b_pad)
    return out[:N, :num_types]


# ---------------------------------------------------------------------------
# MiNer2 forward (embedding gathers / relation sign-flips in plain JAX, dense
# compute in the Pallas kernels above)
# ---------------------------------------------------------------------------
def miner2_forward(params, blocks, *, alpha=0.3, beta=0.3, temperature=1.0, tile_n=512):
    del alpha  # MulLayer / alpha exist in the PyTorch module but are unused by forward()
    entity = params["entity"]          # [num_nodes, D]
    relation = params["relation"]      # [num_rels, D]
    fc_w = params["fc_w"]              # [D, T]
    fc_b = params["fc_b"]              # [T]
    num_rels = relation.shape[0]
    T = fc_w.shape[1]

    def rel_lookup(etype):
        r = jnp.take(relation, etype % num_rels, axis=0)
        sign = jnp.where(etype >= num_rels, -1.0, 1.0).astype(jnp.float32)[..., None]
        return r * sign

    # --- block 0: AGGLayer (edge slabs laid out [deg, N, D]) ---
    b0 = blocks[0]
    src1 = jnp.take(entity, b0["src_ids"], axis=0)                  # [S0, D]
    h0 = jnp.take(src1, b0["nbr"].T, axis=0)                        # [d0, N1, D]
    r0 = rel_lookup(b0["etype"].T)                                  # [d0, N1, D]
    agg = agg_layer(h0, r0, tile_n=tile_n)                          # [N1, D]

    # --- block 1: MTILayer + sigmoid ---
    b1 = blocks[1]
    src2 = jnp.take(entity, b1["src_ids"], axis=0)                  # [N1, D]
    h1 = jnp.take(src2, b1["nbr"].T, axis=0)                        # [d1, N2, D]
    a1 = jnp.take(agg, b1["nbr"].T, axis=0)                         # [d1, N2, D]
    r1 = rel_lookup(b1["etype"].T)                                  # [d1, N2, D]
    return mti_layer(h1, a1, r1, fc_w, fc_b, num_types=T, beta=beta,
                     temperature=temperature, tile_n=tile_n)        # [N2, T]


# ---------------------------------------------------------------------------
# Pure-JAX reference (same math; mirrors the kernel's bf16 fc-matmul inputs)
# ---------------------------------------------------------------------------
def _reference(params, blocks, beta=0.3, temperature=1.0):
    entity, relation = params["entity"], params["relation"]
    fc_w, fc_b = params["fc_w"], params["fc_b"]
    R = relation.shape[0]
    wb = fc_w.astype(jnp.bfloat16)

    def rel_lookup(et):
        r = jnp.take(relation, et % R, axis=0)
        return r * jnp.where(et >= R, -1.0, 1.0)[..., None]

    def fc(x):
        return jnp.dot(x.astype(jnp.bfloat16), wb,
                       preferred_element_type=jnp.float32) + fc_b

    b0, b1 = blocks
    src1 = jnp.take(entity, b0["src_ids"], axis=0)
    agg = jnp.mean(jnp.take(src1, b0["nbr"], axis=0) + rel_lookup(b0["etype"]), axis=1)
    src2 = jnp.take(entity, b1["src_ids"], axis=0)
    rel1 = rel_lookup(b1["etype"])
    msg = jnp.take(src2, b1["nbr"], axis=0) + rel1
    agm = jnp.take(agg, b1["nbr"], axis=0) + rel1

    def branch(x):
        l_each = fc(jnp.maximum(x, 0.0))                               # [N, M, T]
        l_mean = fc(jnp.maximum(jnp.mean(x, axis=1), 0.0))             # [N, T]
        pred = jnp.concatenate([l_each, l_mean[:, None, :]], axis=1)   # [N, M+1, T]
        score = jnp.max(pred, axis=-1) / temperature                   # [N, M+1]
        w = jax.nn.softmax(score, axis=-1)
        return jnp.sum(pred * w[..., None], axis=1)                    # [N, T]

    return jax.nn.sigmoid(beta * branch(msg) + (1.0 - beta) * branch(agm))


if __name__ == "__main__":
    # ----- small deterministic configuration -----
    hidden_dim = 32
    num_nodes = 20
    num_rels = 6
    num_types = 16
    alpha, beta = 0.3, 0.3
    emb_range = 10.0 / hidden_dim

    S0, N1, N2 = 12, 8, 8      # block0 src nodes, block0 dst (= block1 src), block1 dst
    d0, d1 = 4, 4              # fixed in-degrees

    key = jax.random.PRNGKey(0)
    k_ent, k_rel, k_w, k_b, k_g0, k_g1, k_e0, k_e1, k_s0, k_s1 = jax.random.split(key, 10)

    params = {
        "entity": jax.random.uniform(k_ent, (num_nodes, hidden_dim), jnp.float32,
                                     -emb_range, emb_range),
        "relation": jax.random.uniform(k_rel, (num_rels, hidden_dim), jnp.float32,
                                       -emb_range, emb_range),
        # nn.Linear(hidden_dim, num_types): stored as [D, T] (x @ W + b)
        "fc_w": jax.random.uniform(k_w, (hidden_dim, num_types), jnp.float32,
                                   -(1.0 / hidden_dim) ** 0.5, (1.0 / hidden_dim) ** 0.5),
        "fc_b": jax.random.uniform(k_b, (num_types,), jnp.float32,
                                   -(1.0 / hidden_dim) ** 0.5, (1.0 / hidden_dim) ** 0.5),
    }

    blocks = [
        {   # block 0
            "src_ids": jax.random.randint(k_s0, (S0,), 0, num_nodes, jnp.int32),
            "nbr": jax.random.randint(k_g0, (N1, d0), 0, S0, jnp.int32),
            "etype": jax.random.randint(k_e0, (N1, d0), 0, 2 * num_rels, jnp.int32),
        },
        {   # block 1 (its src nodes are block 0's dst nodes)
            "src_ids": jax.random.randint(k_s1, (N1,), 0, num_nodes, jnp.int32),
            "nbr": jax.random.randint(k_g1, (N2, d1), 0, N1, jnp.int32),
            "etype": jax.random.randint(k_e1, (N2, d1), 0, 2 * num_rels, jnp.int32),
        },
    ]

    out = miner2_forward(params, blocks, alpha=alpha, beta=beta)
    out = jax.block_until_ready(out)

    ref = _reference(params, blocks, beta=beta)
    assert out.shape == (N2, num_types)
    err = float(jnp.max(jnp.abs(out - ref)))
    assert err < 3e-3, f"mismatch vs pure-JAX reference: max abs err {err}"

    print("KERNEL_OK")
</pallas_src>

<mosaic_0001>
module attributes {stable_mosaic.version = 11 : i64} {
  func.func @_agg_kernel(%arg0: i32, %arg1: memref<4x8x32xf32, #tpu.memory_space<vmem>>, %arg2: memref<4x8x32xf32, #tpu.memory_space<vmem>>, %arg3: memref<8x32xf32, #tpu.memory_space<vmem>>) attributes {dimension_semantics = [#tpu.dimension_semantics<parallel>], iteration_bounds = array<i64: 1>, scalar_prefetch = 0 : i64, scratch_operands = 0 : i64, tpu.core_type = #tpu.core_type<tc>, window_params = [{transform_indices = @transform_0, window_bounds = array<i64: 4, 8, 32>}, {transform_indices = @transform_1, window_bounds = array<i64: 4, 8, 32>}, {transform_indices = @transform_2, window_bounds = array<i64: 8, 32>}]} {
    %c0 = arith.constant 0 : index
    %c0_0 = arith.constant 0 : index
    %c0_1 = arith.constant 0 : index
    %0 = vector.load %arg1[%c0, %c0_0, %c0_1] : memref<4x8x32xf32, #tpu.memory_space<vmem>>, vector<1x8x32xf32>
    %1 = vector.shape_cast %0 : vector<1x8x32xf32> to vector<8x32xf32>
    %c0_2 = arith.constant 0 : index
    %c0_3 = arith.constant 0 : index
    %c0_4 = arith.constant 0 : index
    %2 = vector.load %arg2[%c0_2, %c0_3, %c0_4] : memref<4x8x32xf32, #tpu.memory_space<vmem>>, vector<1x8x32xf32>
    %3 = vector.shape_cast %2 : vector<1x8x32xf32> to vector<8x32xf32>
    %4 = arith.addf %1, %3 : vector<8x32xf32>
    %c1 = arith.constant 1 : index
    %c0_5 = arith.constant 0 : index
    %c0_6 = arith.constant 0 : index
    %5 = vector.load %arg1[%c1, %c0_5, %c0_6] : memref<4x8x32xf32, #tpu.memory_space<vmem>>, vector<1x8x32xf32>
    %6 = vector.shape_cast %5 : vector<1x8x32xf32> to vector<8x32xf32>
    %7 = arith.addf %4, %6 : vector<8x32xf32>
    %c1_7 = arith.constant 1 : index
    %c0_8 = arith.constant 0 : index
    %c0_9 = arith.constant 0 : index
    %8 = vector.load %arg2[%c1_7, %c0_8, %c0_9] : memref<4x8x32xf32, #tpu.memory_space<vmem>>, vector<1x8x32xf32>
    %9 = vector.shape_cast %8 : vector<1x8x32xf32> to vector<8x32xf32>
    %10 = arith.addf %7, %9 : vector<8x32xf32>
    %c2 = arith.constant 2 : index
    %c0_10 = arith.constant 0 : index
    %c0_11 = arith.constant 0 : index
    %11 = vector.load %arg1[%c2, %c0_10, %c0_11] : memref<4x8x32xf32, #tpu.memory_space<vmem>>, vector<1x8x32xf32>
    %12 = vector.shape_cast %11 : vector<1x8x32xf32> to vector<8x32xf32>
    %13 = arith.addf %10, %12 : vector<8x32xf32>
    %c2_12 = arith.constant 2 : index
    %c0_13 = arith.constant 0 : index
    %c0_14 = arith.constant 0 : index
    %14 = vector.load %arg2[%c2_12, %c0_13, %c0_14] : memref<4x8x32xf32, #tpu.memory_space<vmem>>, vector<1x8x32xf32>
    %15 = vector.shape_cast %14 : vector<1x8x32xf32> to vector<8x32xf32>
    %16 = arith.addf %13, %15 : vector<8x32xf32>
    %c3 = arith.constant 3 : index
    %c0_15 = arith.constant 0 : index
    %c0_16 = arith.constant 0 : index
    %17 = vector.load %arg1[%c3, %c0_15, %c0_16] : memref<4x8x32xf32, #tpu.memory_space<vmem>>, vector<1x8x32xf32>
    %18 = vector.shape_cast %17 : vector<1x8x32xf32> to vector<8x32xf32>
    %19 = arith.addf %16, %18 : vector<8x32xf32>
    %c3_17 = arith.constant 3 : index
    %c0_18 = arith.constant 0 : index
    %c0_19 = arith.constant 0 : index
    %20 = vector.load %arg2[%c3_17, %c0_18, %c0_19] : memref<4x8x32xf32, #tpu.memory_space<vmem>>, vector<1x8x32xf32>
    %21 = vector.shape_cast %20 : vector<1x8x32xf32> to vector<8x32xf32>
    %22 = arith.addf %19, %21 : vector<8x32xf32>
    %cst = arith.constant 2.500000e-01 : f32
    %23 = vector.broadcast %cst : f32 to vector<8x32xf32>
    %24 = arith.mulf %22, %23 : vector<8x32xf32>
    %c0_20 = arith.constant 0 : index
    %c0_21 = arith.constant 0 : index
    %25 = vector.load %arg3[%c0_20, %c0_21] : memref<8x32xf32, #tpu.memory_space<vmem>>, vector<8x32xf32>
    tpu.vector_store %arg3[%c0_20, %c0_21], %24 {strides = array<i32>} : memref<8x32xf32, #tpu.memory_space<vmem>>, vector<8x32xf32>,
    return
  }
  func.func @transform_0(%arg0: i32) -> (i32, i32, i32) {
    %c0_i32 = arith.constant 0 : i32
    %c0_i32_0 = arith.constant 0 : i32
    %c0_i32_1 = arith.constant 0 : i32
    return %c0_i32, %arg0, %c0_i32_0 : i32, i32, i32
  }
  func.func @transform_1(%arg0: i32) -> (i32, i32, i32) {
    %c0_i32 = arith.constant 0 : i32
    %c0_i32_0 = arith.constant 0 : i32
    %c0_i32_1 = arith.constant 0 : i32
    return %c0_i32, %arg0, %c0_i32_0 : i32, i32, i32
  }
  func.func @transform_2(%arg0: i32) -> (i32, i32) {
    %c0_i32 = arith.constant 0 : i32
    %c0_i32_0 = arith.constant 0 : i32
    return %arg0, %c0_i32 : i32, i32
  }
}

</mosaic_0001>

<bundles_post_ra>
// kernel: tpu_custom_call.1
= control target key start
LH: loop header
LB: loop body
LE: loop exit
PB: predicated region body
PF: predicated region fallthrough
CT: control target
= control target key end

     0   :  { %7 = vsyncpa [#allocation3], 0  ;;  %s198_s0 = inlined_call_operand.hbm [shape: f32[4,8,32], index: 0, kind: input, shape index: {}]   ;;  %s199_s1 = inlined_call_operand.hbm [shape: f32[4,8,32], index: 1, kind: input, shape index: {}]   ;;  %s200_s2 = inlined_call_operand.hbm [shape: f32[8,32], index: 2, kind: output, shape index: {}]  }
   0x1   :  { %8 = vsyncpa [#allocation6], 0 }
   0x2   :  { %9 = vsyncpa [#allocation4], 0  ;;  %s14_s11 = sshll.u32 %s198_s0, 4  ;;  %s169_s12 = smov [#allocation2]   ;;  %s15_s11 = int_to_ptr.hbm [resolvable:$true] %s14_s11 }
   0x3   :  { %s16_s13 = sshll.u32 %s169_s12, 4  ;;  %s27_s16 = sshll.u32 %s199_s1, 4  ;;  %s17_s13 = int_to_ptr.vmem [resolvable:$true] %s16_s13  ;;  %s28_s16 = int_to_ptr.hbm [resolvable:$true] %s27_s16 }
   0x4   :  { %s170_s17 = smov 128   ;;  %s171_s18 = smov 8  }
   0x5   :  { %22 = dma.hbm_to_vmem [thread:$0]  %s15_s11, 512, %s17_s13, [#allocation3], %s170_s17, %s170_s17, %s171_s18  }
   0x6   :  { %s172_s19 = smov [#allocation5]  }
   0x7   :  { %s29_s20 = sshll.u32 %s172_s19, 4  ;;  %s30_s20 = int_to_ptr.vmem [resolvable:$true] %s29_s20 }
   0x8   :  { %35 = dma.hbm_to_vmem [thread:$0]  %s28_s16, 512, %s30_s20, [#allocation6], %s170_s17, %s170_s17, %s171_s18  }
   0x9   :  { %163 = dma.done.wait [#allocation3], 512  }
   0xa   :  { %164 = vsyncadd [#allocation3], 4294966784 }
   0xb   :  { %165 = dma.done.wait [#allocation6], 512  }
   0xc   :  { %166 = vsyncadd [#allocation6], 4294966784  ;;  %v44_v0 = vld [vmem:[#allocation2] sm:$0xff]  ;;  %v48_v2 = vld [vmem:[#allocation2 + $0x8] sm:$0xff]  ;;  %s173_s0 = smov [#allocation7]   ;;  %s75_s23 = sshll.u32 %s200_s2, 4  ;;  %s76_s23 = int_to_ptr.hbm [resolvable:$true] %s75_s23 }
   0xd   :  { %v45_v1 = vld [vmem:[#allocation5] sm:$0xff]  ;;  %v51_v4 = vld [vmem:[#allocation5 + $0x8] sm:$0xff]  ;;  %v54_v6 = vld [vmem:[#allocation2 + $0x10] sm:$0xff]  ;;  %s73_s1 = sshll.u32 %s173_s0, 4  ;;  %vm66_vm0 = vcmask 261120   ;;  %s74_s1 = int_to_ptr.vmem [resolvable:$true] %s73_s1 }
   0xe   :  { %v46_v3 = vadd.f32 %v45_v1, %v44_v0  ;;  %v57_v8 = vld [vmem:[#allocation5 + $0x10] sm:$0xff]  ;;  %v60_v10 = vld [vmem:[#allocation2 + $0x18] sm:$0xff] }
   0xf   :  { %v63_v12 = vld [vmem:[#allocation5 + $0x18] sm:$0xff] }
  0x10   :  { %v49_v5 = vadd.f32 %v48_v2, %v46_v3 }
  0x12   :  { %v52_v7 = vadd.f32 %v51_v4, %v49_v5 }
  0x14   :  { %v55_v9 = vadd.f32 %v54_v6, %v52_v7 }
  0x16   :  { %v58_v11 = vadd.f32 %v57_v8, %v55_v9 }
  0x18   :  { %v61_v13 = vadd.f32 %v60_v10, %v58_v11 }
  0x1a   :  { %v64_v14 = vadd.f32 %v63_v12, %v61_v13 }
  0x1c   :  { %v65_v15 = vmul.f32 0.25, %v64_v14 }
  0x1e   :  { %67 = vst.msk [vmem:[#allocation7] sm:$0xff] %vm66_vm0, %v65_v15 }
  0x1f   :  { %78 = dma.vmem_to_hbm [thread:$0]  %s74_s1, 128, %s76_s23, [#allocation4]  }
  0x20   :  { %167 = dma.done.wait [#allocation4], 128  }
  0x21   :  { %168 = vsyncadd [#allocation4], 4294967168 }
  0x22   :  { %83 = vsyncpa [#allocation3], 1 }
  0x23   :  { %84 = vsyncpa [#allocation6], 1 }
  0x24   :  { %85 = vsyncpa [#allocation4], 1 }

</bundles_post_ra>
